<compile_context>
chip_gen: v5e
topology: v5e:2x2
jax: 0.10.0
libtpu: 0.0.40
codegen_flags: <defaults>
</compile_context>

<pallas_src>
import jax
import jax.numpy as jnp
from jax import lax
from jax.experimental import pallas as pl
from jax.experimental.pallas import tpu as pltpu

# ----------------------------- hyperparameters ------------------------------
BATCH_SIZE = 2
TOTAL_LENGTH = 8          # sequence length (padded)
WORD_DIM = 16             # embedding dim
VOCAB_SIZE = 50
CLASS_SIZE = 2
FILTERS = [2, 3, 4]       # filter widths (in words)
FILTER_NUM = [8, 8, 8]    # number of filters per width
PADDING_IDX = 0
BERT_EMB_SIZE = 0         # bert_output=None path
DROPOUT_PROB = 0.5        # eval mode -> dropout is identity

F_TOTAL = sum(FILTER_NUM)                                     # 24
TAP_COLS = sum(f * fn for f, fn in zip(FILTERS, FILTER_NUM))  # 72


# ------------------------------ Pallas kernel -------------------------------
def fused_cnn_kernel(ids_ref, wtap_ref, bconv_ref, wfc_ref, bfc_ref, o_ref):
    """Embedding gather + all conv branches + ReLU + max-pool + FC, fused.

    ids_ref   : [B*L, 1]   int32   token ids
    wtap_ref  : [V, 72]    f32     embedding table pre-folded into tap-stacked
                                   conv weights (all branches, all taps)
    bconv_ref : [1, 24]    f32     concatenated conv biases
    wfc_ref   : [24, C]    f32     fc weight (pre-transposed)
    bfc_ref   : [1, C]     f32     fc bias
    o_ref     : [B, C]     f32     logits
    """
    BL = BATCH_SIZE * TOTAL_LENGTH

    # --- embedding lookup + all conv taps as ONE one-hot matmul --------------
    # emb[ids] @ W_tap == one_hot(ids) @ (emb @ W_tap); (emb @ W_tap) is
    # precomputed at pack time, so this is the only MXU op for the conv stage.
    ids = ids_ref[...]                                           # [B*L, 1]
    vocab_iota = lax.broadcasted_iota(jnp.int32, (BL, VOCAB_SIZE), 1)
    one_hot = (ids == vocab_iota).astype(jnp.float32)            # [B*L, V]
    y = jnp.dot(one_hot, wtap_ref[...],
                preferred_element_type=jnp.float32)              # [B*L, 72]
    y = y.reshape(BATCH_SIZE, TOTAL_LENGTH, TAP_COLS)            # [B, L, 72]

    # --- shifted-row sums (conv over time) + max-pool per branch -------------
    pooled = []
    col = 0
    for f, fn in zip(FILTERS, FILTER_NUM):
        n_pos = TOTAL_LENGTH - f + 1
        # conv at position t = sum_j  word_{t+j} @ tap_j  (shifted-row sum)
        s = y[:, 0:n_pos, col:col + fn]
        for j in range(1, f):
            s = s + y[:, j:j + n_pos, col + j * fn: col + (j + 1) * fn]
        pooled.append(jnp.max(s, axis=1))                        # [B, fn]
        col += f * fn

    feat = jnp.concatenate(pooled, axis=1)                       # [B, 24]
    # bias-add + ReLU hoisted out of the position loop (monotone => exact)
    feat = jnp.maximum(feat + bconv_ref[...], 0.0)

    # dropout = identity in eval mode; final linear layer
    o_ref[...] = (jnp.dot(feat, wfc_ref[...],
                          preferred_element_type=jnp.float32) + bfc_ref[...])


def _vmem():
    return pl.BlockSpec(memory_space=pltpu.MemorySpace.VMEM)


@jax.jit
def cnn_forward(packed, inp):
    """Sentence-level prediction forward (FORWARD_TYPE_SENTENCE_LEVEL_PREDICTION)."""
    ids = inp.reshape(BATCH_SIZE * TOTAL_LENGTH, 1).astype(jnp.int32)
    return pl.pallas_call(
        fused_cnn_kernel,
        out_shape=jax.ShapeDtypeStruct((BATCH_SIZE, CLASS_SIZE), jnp.float32),
        in_specs=[_vmem()] * 5,
        out_specs=_vmem(),
    )(ids, packed["w_tap"], packed["b_conv"], packed["w_fc"], packed["b_fc"])


# ------------------------------ parameters ----------------------------------
def init_params(key):
    """PyTorch-layout parameters (Conv1d weight [FN, f*D], fc weight [C, F])."""
    keys = jax.random.split(key, 2 + 2 * len(FILTERS) + 2)
    params = {}
    emb = jax.random.normal(keys[0], (VOCAB_SIZE, WORD_DIM), jnp.float32) * 0.1
    emb = emb.at[PADDING_IDX].set(0.0)          # nn.Embedding(padding_idx=...)
    params["embedding"] = emb
    for i, (f, fn) in enumerate(zip(FILTERS, FILTER_NUM)):
        k = (WORD_DIM + BERT_EMB_SIZE) * f
        params[f"conv_{i}_w"] = jax.random.normal(
            keys[2 + 2 * i], (fn, k), jnp.float32) * 0.05
        params[f"conv_{i}_b"] = jax.random.normal(
            keys[3 + 2 * i], (fn,), jnp.float32) * 0.05
    params["fc_w"] = jax.random.normal(keys[-2], (CLASS_SIZE, F_TOTAL),
                                       jnp.float32) * 0.05
    params["fc_b"] = jax.random.normal(keys[-1], (CLASS_SIZE,),
                                       jnp.float32) * 0.05
    return params


def pack_params(params):
    """One-time weight pre-packing.

    Builds the tap-stacked conv weight [D, 72], then folds the embedding table
    into it:  w_tap = emb @ w_conv  -> [V, 72], so the kernel does a single
    one-hot matmul for embedding + all conv branches.  Also transposes fc.
    """
    taps, biases = [], []
    for i, (f, fn) in enumerate(zip(FILTERS, FILTER_NUM)):
        wt = params[f"conv_{i}_w"].T                              # [f*D, FN]
        for j in range(f):
            taps.append(wt[j * WORD_DIM:(j + 1) * WORD_DIM, :])   # [D, FN]
        biases.append(params[f"conv_{i}_b"])
    w_conv = jnp.concatenate(taps, axis=1)                        # [D, 72]
    return {
        "w_tap": params["embedding"] @ w_conv,                         # [V, 72]
        "b_conv": jnp.concatenate(biases).reshape(1, F_TOTAL),         # [1, 24]
        "w_fc": params["fc_w"].T,                                      # [24, C]
        "b_fc": params["fc_b"].reshape(1, CLASS_SIZE),                 # [1, C]
    }


# --------------------------- pure-JAX reference ------------------------------
def reference_forward(params, inp):
    x = params["embedding"][inp]                               # [B, L, D]
    x_flat = x.reshape(inp.shape[0], TOTAL_LENGTH * WORD_DIM)
    outs = []
    for i, (f, fn) in enumerate(zip(FILTERS, FILTER_NUM)):
        w = params[f"conv_{i}_w"]                              # [fn, f*D]
        b = params[f"conv_{i}_b"]
        cols = []
        for t in range(TOTAL_LENGTH - f + 1):
            win = x_flat[:, t * WORD_DIM:(t + f) * WORD_DIM]
            cols.append(win @ w.T + b)                         # [B, fn]
        s = jnp.stack(cols, axis=1)                            # [B, n_pos, fn]
        outs.append(jnp.max(jax.nn.relu(s), axis=1))           # [B, fn]
    feat = jnp.concatenate(outs, axis=1)
    return feat @ params["fc_w"].T + params["fc_b"]


# TODO(synk): the sequence-labeling / feature-extraction / exemplar branches
# (argmax-pool indices + scatter_add_ token contributions) are not ported;
# only the sentence-level prediction path is implemented.


if __name__ == "__main__":
    key = jax.random.PRNGKey(0)
    pkey, dkey = jax.random.split(key)
    params = init_params(pkey)
    packed = pack_params(params)

    inp = jax.random.randint(dkey, (BATCH_SIZE, TOTAL_LENGTH), 0, VOCAB_SIZE,
                             dtype=jnp.int32)
    inp = inp.at[:, -2:].set(PADDING_IDX)      # mimic trailing padding

    logits = cnn_forward(packed, inp)
    jax.block_until_ready(logits)

    assert logits.shape == (BATCH_SIZE, CLASS_SIZE)
    assert logits.dtype == jnp.float32

    ref = reference_forward(params, inp)
    assert jnp.allclose(logits, ref, rtol=1e-3, atol=1e-3), (logits, ref)

    print("KERNEL_OK")
</pallas_src>

<mosaic_0001>
module attributes {stable_mosaic.version = 11 : i64} {
  func.func @fused_cnn_kernel(%arg0: memref<16x1xi32, #tpu.memory_space<vmem>>, %arg1: memref<50x72xf32, #tpu.memory_space<vmem>>, %arg2: memref<1x24xf32, #tpu.memory_space<vmem>>, %arg3: memref<24x2xf32, #tpu.memory_space<vmem>>, %arg4: memref<1x2xf32, #tpu.memory_space<vmem>>, %arg5: memref<2x2xf32, #tpu.memory_space<vmem>>) attributes {dimension_semantics = [], scalar_prefetch = 0 : i64, scratch_operands = 0 : i64, tpu.core_type = #tpu.core_type<tc>} {
    %c0 = arith.constant 0 : index
    %c0_0 = arith.constant 0 : index
    %0 = vector.load %arg0[%c0, %c0_0] : memref<16x1xi32, #tpu.memory_space<vmem>>, vector<16x1xi32>
    %1 = tpu.iota {dimensions = array<i32: 1>} : vector<16x50xi32>
    %2 = vector.broadcast %0 : vector<16x1xi32> to vector<16x50xi32>
    %3 = arith.cmpi eq, %2, %1 : vector<16x50xi32>
    %4 = arith.extui %3 : vector<16x50xi1> to vector<16x50xi32>
    %5 = arith.sitofp %4 : vector<16x50xi32> to vector<16x50xf32>
    %c0_1 = arith.constant 0 : index
    %c0_2 = arith.constant 0 : index
    %6 = vector.load %arg1[%c0_1, %c0_2] : memref<50x72xf32, #tpu.memory_space<vmem>>, vector<50x72xf32>
    %cst = arith.constant dense<0.000000e+00> : vector<16x72xf32>
    %7 = tpu.matmul %5, %6, %cst {dimension_numbers = #tpu.dot_dimension_numbers<[1], [0], [0], [1], [0, 0, 1, 1], [], []>} : vector<16x50xf32>, vector<50x72xf32>, vector<16x72xf32> -> vector<16x72xf32>
    %8 = vector.shape_cast %7 : vector<16x72xf32> to vector<2x8x72xf32>
    %9 = vector.extract_strided_slice %8 {offsets = [0, 0, 0], sizes = [2, 7, 8], strides = [1, 1, 1]} : vector<2x8x72xf32> to vector<2x7x8xf32>
    %10 = vector.extract_strided_slice %8 {offsets = [0, 1, 8], sizes = [2, 7, 8], strides = [1, 1, 1]} : vector<2x8x72xf32> to vector<2x7x8xf32>
    %11 = arith.addf %9, %10 : vector<2x7x8xf32>
    %cst_3 = arith.constant dense<0xFF800000> : vector<2x8xf32>
    %12 = vector.multi_reduction <maximumf>, %11, %cst_3 [1] : vector<2x7x8xf32> to vector<2x8xf32>
    %13 = vector.extract_strided_slice %8 {offsets = [0, 0, 16], sizes = [2, 6, 8], strides = [1, 1, 1]} : vector<2x8x72xf32> to vector<2x6x8xf32>
    %14 = vector.extract_strided_slice %8 {offsets = [0, 1, 24], sizes = [2, 6, 8], strides = [1, 1, 1]} : vector<2x8x72xf32> to vector<2x6x8xf32>
    %15 = arith.addf %13, %14 : vector<2x6x8xf32>
    %16 = vector.extract_strided_slice %8 {offsets = [0, 2, 32], sizes = [2, 6, 8], strides = [1, 1, 1]} : vector<2x8x72xf32> to vector<2x6x8xf32>
    %17 = arith.addf %15, %16 : vector<2x6x8xf32>
    %cst_4 = arith.constant dense<0xFF800000> : vector<2x8xf32>
    %18 = vector.multi_reduction <maximumf>, %17, %cst_4 [1] : vector<2x6x8xf32> to vector<2x8xf32>
    %19 = vector.extract_strided_slice %8 {offsets = [0, 0, 40], sizes = [2, 5, 8], strides = [1, 1, 1]} : vector<2x8x72xf32> to vector<2x5x8xf32>
    %20 = vector.extract_strided_slice %8 {offsets = [0, 1, 48], sizes = [2, 5, 8], strides = [1, 1, 1]} : vector<2x8x72xf32> to vector<2x5x8xf32>
    %21 = arith.addf %19, %20 : vector<2x5x8xf32>
    %22 = vector.extract_strided_slice %8 {offsets = [0, 2, 56], sizes = [2, 5, 8], strides = [1, 1, 1]} : vector<2x8x72xf32> to vector<2x5x8xf32>
    %23 = arith.addf %21, %22 : vector<2x5x8xf32>
    %24 = vector.extract_strided_slice %8 {offsets = [0, 3, 64], sizes = [2, 5, 8], strides = [1, 1, 1]} : vector<2x8x72xf32> to vector<2x5x8xf32>
    %25 = arith.addf %23, %24 : vector<2x5x8xf32>
    %cst_5 = arith.constant dense<0xFF800000> : vector<2x8xf32>
    %26 = vector.multi_reduction <maximumf>, %25, %cst_5 [1] : vector<2x5x8xf32> to vector<2x8xf32>
    %27 = tpu.concatenate %12, %18, %26 in 1 : vector<2x8xf32>, vector<2x8xf32>, vector<2x8xf32> -> vector<2x24xf32>
    %c0_6 = arith.constant 0 : index
    %c0_7 = arith.constant 0 : index
    %28 = vector.load %arg2[%c0_6, %c0_7] : memref<1x24xf32, #tpu.memory_space<vmem>>, vector<1x24xf32>
    %29 = vector.broadcast %28 : vector<1x24xf32> to vector<2x24xf32>
    %30 = arith.addf %27, %29 : vector<2x24xf32>
    %cst_8 = arith.constant 0.000000e+00 : f32
    %31 = vector.broadcast %cst_8 : f32 to vector<2x24xf32>
    %32 = arith.maximumf %30, %31 : vector<2x24xf32>
    %c0_9 = arith.constant 0 : index
    %c0_10 = arith.constant 0 : index
    %33 = vector.load %arg3[%c0_9, %c0_10] : memref<24x2xf32, #tpu.memory_space<vmem>>, vector<24x2xf32>
    %cst_11 = arith.constant dense<0.000000e+00> : vector<2x2xf32>
    %34 = tpu.matmul %32, %33, %cst_11 {dimension_numbers = #tpu.dot_dimension_numbers<[1], [0], [0], [1], [0, 0, 1, 1], [], []>} : vector<2x24xf32>, vector<24x2xf32>, vector<2x2xf32> -> vector<2x2xf32>
    %c0_12 = arith.constant 0 : index
    %c0_13 = arith.constant 0 : index
    %35 = vector.load %arg4[%c0_12, %c0_13] : memref<1x2xf32, #tpu.memory_space<vmem>>, vector<1x2xf32>
    %36 = vector.broadcast %35 : vector<1x2xf32> to vector<2x2xf32>
    %37 = arith.addf %34, %36 : vector<2x2xf32>
    %c0_14 = arith.constant 0 : index
    %c0_15 = arith.constant 0 : index
    %38 = vector.load %arg5[%c0_14, %c0_15] : memref<2x2xf32, #tpu.memory_space<vmem>>, vector<2x2xf32>
    tpu.vector_store %arg5[%c0_14, %c0_15], %37 {strides = array<i32>} : memref<2x2xf32, #tpu.memory_space<vmem>>, vector<2x2xf32>,
    return
  }
}

</mosaic_0001>

<bundles_post_ra>
// kernel: cnn_forward.1
= control target key start
LH: loop header
LB: loop body
LE: loop exit
PB: predicated region body
PF: predicated region fallthrough
CT: control target
= control target key end

     0   :  { %10 = vsyncpa [#allocation3], 0  ;;  %s406_s0 = inlined_call_operand.vmem [shape: s32[16,1], index: 0, kind: input, shape index: {}]   ;;  %s407_s1 = inlined_call_operand.hbm [shape: f32[50,72], index: 1, kind: input, shape index: {}]   ;;  %s408_s2 = inlined_call_operand.vmem [shape: f32[1,24], index: 2, kind: input, shape index: {}]   ;;  %s409_s3 = inlined_call_operand.vmem [shape: f32[24,2], index: 3, kind: input, shape index: {}]   ;;  %s410_s4 = inlined_call_operand.vmem [shape: f32[1,2], index: 4, kind: input, shape index: {}]   ;;  %s411_s5 = inlined_call_operand.hbm [shape: f32[2,2], index: 5, kind: output, shape index: {}]  }
   0x1   :  { %11 = vsyncpa [#allocation4], 0  ;;  %s18_s20 = sshll.u32 %s407_s1, 4  ;;  %s325_s21 = smov [#allocation2]   ;;  %s19_s20 = int_to_ptr.hbm [resolvable:$true] %s18_s20 }
   0x2   :  { %s20_s22 = sshll.u32 %s325_s21, 4  ;;  %s326_s23 = smov 128   ;;  %s21_s22 = int_to_ptr.vmem [resolvable:$true] %s20_s22 }
   0x3   :  { %s327_s24 = smov 8  }
   0x4   :  { %26 = dma.hbm_to_vmem [thread:$0]  %s19_s20, 896, %s21_s22, [#allocation3], %s326_s23, %s326_s23, %s327_s24  }
   0x5   :  { %321 = dma.done.wait [#allocation3], 896  }
   0x6   :  { %322 = vsyncadd [#allocation3], 4294966400  ;;  %v328_v0 = vmov 0   ;;  %vm67_vm0 = vcmask 1041408   ;;  %v38_v1 = vld [vmem:[%s406_s0 + $0x8] sm:$0xff]  ;;  %v57_v4 = vld [vmem:[#allocation2 + $0x20] sm:$0xff]  ;;  %v39_v10 = vlaneseq }
   0x7   :  { %270 = vset.pattern.permute.xlu0 %v328_v0  ;;  %v59_v2 = vld [vmem:[#allocation2 + $0x30] sm:$0x3]  ;;  %v58_v3 = vld [vmem:[#allocation2 + $0x28] sm:$0xff]  ;;  %v56_v5 = vld [vmem:[#allocation2 + $0x18] sm:$0xff]  ;;  %vm60_vm1 = vcmask 408576   ;;  %v329_v13 = vmov 0.0  }
   0x8   :  { %45 = vperm.xlu0 %270, %v38_v1   ;;  %254 = vmatpush.msk.msra.mxu2 %vm67_vm0, %v59_v2  ;;  %v37_v6 = vld [vmem:[%s406_s0] sm:$0xff]  ;;  %v55_v7 = vld [vmem:[#allocation2 + $0x10] sm:$0xff]  ;;  %v54_v8 = vld [vmem:[#allocation2 + $0x8] sm:$0xff]  ;;  %v40_v11 = vand.u32 127, %v39_v10  ;;  %s330_s0 = smov 104   ;;  %s331_s28 = smov 112  }
   0x9   :  { %250 = vmatpush.msk.msra.mxu0 %vm67_vm0, %v59_v2  ;;  %v53_v9 = vld [vmem:[#allocation2] sm:$0xff]  ;;  %s332_s29 = smov 120   ;;  %vm106_vm4 = vcmask 63488   ;;  %vm131_vm5 = vcmask 193664   ;;  %vm156_vm6 = vcmask 389440   ;;  %vm173_vm7 = vcmask 1041409  }
   0xa   :  { %255 = vmatpush.msra.mxu2 %v58_v3  ;;  %vm188_vm8 = vcmask 64512   ;;  %vm190_vm9 = vcmask 130048   ;;  %vm205_vm10 = vcmask 195584   ;;  %s238_s18 = sshll.u32 %s411_s5, 4  ;;  %vm229_vm11 = vcmask 9216   ;;  %s239_s18 = int_to_ptr.hbm [resolvable:$true] %s238_s18 }
   0xb   :  { %81 = vmatpush.msra.mxu0 %v58_v3 }
   0xc   :  { %256 = vmatpush.msra.mxu2 %v57_v4 }
   0xd   :  { %82 = vmatpush.msra.mxu0 %v57_v4 }
   0xe   :  { %257 = vmatpush.msra.mxu2 %v56_v5 }
   0xf   :  { %83 = vmatpush.msra.mxu0 %v56_v5 }
  0x10   :  { %42 = vperm.xlu0 %270, %v37_v6   ;;  %258 = vmatpush.msra.mxu2 %v55_v7 }
  0x11   :  { %84 = vmatpush.msra.mxu0 %v55_v7 }
  0x12   :  { %259 = vmatpush.msra.mxu2 %v54_v8 }
  0x13   :  { %85 = vmatpush.msra.mxu0 %v54_v8 }
  0x14   :  { %260 = vmatpush.msra.mxu2 %v53_v9 }
  0x15   :  { %86 = vmatpush.msra.mxu0 %v53_v9 }
  0x7a   :  { %v46_v12 = vpop.permute.xlu0 %45 }
  0x7b   :  { %vm48_vm2 = vcmp.eq.s32.totalorder %v46_v12, %v40_v11 }
  0x7c   :  { %v249_v14 = vsel %vm48_vm2, 1.0, %v329_v13 }
  0x7d   :  { %252 = vmatmul.msk.f32.vlgmr.msra.gmra.mxu2 %vm60_vm1, %v249_v14 }
  0x82   :  { %v43_v15 = vpop.permute.xlu0 %42 }
  0x83   :  { %vm47_vm3 = vcmp.eq.s32.totalorder %v43_v15, %v40_v11 }
  0x84   :  { %v248_v16 = vsel %vm47_vm3, 1.0, %v329_v13 }
  0x85   :  { %251 = vmatmul.msk.f32.vlgmr.msra.gmra.mxu0 %vm60_vm1, %v248_v16 }
 0x100   :  { %v91_v21 = vpop.f32.mrf.mxu2 }
 0x101   :  { %v122_v22 = vrot.slane %v91_v21, 2  ;;  %v97_v23 = vrot.slane %v91_v21, 1  ;;  %v147_v24 = vrot.slane %v91_v21, 3 }
 0x102   :  { %v88_v17 = vpop.f32.mrf.mxu0 }
 0x103   :  { %v146_v18 = vrot.slane %v88_v17, 3  ;;  %v121_v19 = vrot.slane %v88_v17, 2  ;;  %v96_v20 = vrot.slane %v88_v17, 1 }
 0x105   :  { %148 = vrot.lane.b32.xlu0 %v146_v18, %s330_s0  ;;  %123 = vrot.lane.b32.xlu2 %v121_v19, %s331_s28  ;;  %v200_v18 = vld [vmem:[%s409_s3 + $0x10] sm:$0xff]  ;;  %v199_v19 = vld [vmem:[%s409_s3 + $0x8] sm:$0xff] }
 0x106   :  { %98 = vrot.lane.b32.xlu1 %v96_v20, %s332_s29  ;;  %222 = vmatpush.msra.mxu1 %v200_v18  ;;  %v198_v20 = vld [vmem:[%s409_s3] sm:$0xff]  ;;  %s333_s3 = smov [#allocation5]  }
 0x107   :  { %s236_s15 = sshll.u32 %s333_s3, 4  ;;  %s237_s15 = int_to_ptr.vmem [resolvable:$true] %s236_s15 }
 0x108   :  { %223 = vmatpush.msra.mxu1 %v199_v19 }
 0x10a   :  { %224 = vmatpush.msra.mxu1 %v198_v20 }
 0x10d   :  { %125 = vrot.lane.b32.xlu2 %v122_v22, %s331_s28  ;;  %v271_v22 = vld [vmem:[%s408_s2] ss:$0 sm:$0xff] }
 0x10e   :  { %100 = vrot.lane.b32.xlu1 %v97_v23, %s332_s29 }
 0x116   :  { %150 = vrot.lane.b32.xlu1 %v147_v24, %s330_s0 }
 0x15f   :  { %v124_v25 = vpop.permute.xlu2 %123 }
 0x167   :  { %v126_v41 = vpop.permute.xlu2 %125 }
 0x177   :  { %v149_v30 = vpop.permute.xlu0 %148 }
 0x178   :  { %v99_v26 = vpop.permute.xlu1 %98 }
 0x179   :  { %v104_v27 = vadd.f32 %v99_v26, %v88_v17 }
 0x17b   :  { %v107_v28 = vsel %vm106_vm4, %v104_v27, -inf  ;;  %v129_v29 = vadd.f32 %v124_v25, %v104_v27 }
 0x17c   :  { %v108_v31 = vrot.slane %v107_v28, 4 }
 0x17d   :  { %v132_v32 = vsel %vm131_vm5, %v129_v29, -inf  ;;  %v154_v33 = vadd.f32 %v149_v30, %v129_v29 }
 0x17e   :  { %v109_v34 = vmax.f32 %v107_v28, %v108_v31  ;;  %v133_v35 = vrot.slane %v132_v32, 4  ;;  %v272_v28 = vld [vmem:[%s410_s4] ss:$0 sm:$0xff] }
 0x17f   :  { %v157_v36 = vsel %vm156_vm6, %v154_v33, -inf }
 0x180   :  { %v134_v37 = vmax.f32 %v132_v32, %v133_v35  ;;  %v101_v38 = vpop.permute.xlu1 %100  ;;  %v110_v39 = vrot.slane %v109_v34, 2  ;;  %v158_v42 = vrot.slane %v157_v36, 4 }
 0x181   :  { %v105_v40 = vadd.f32 %v101_v38, %v91_v21 }
 0x182   :  { %v135_v45 = vrot.slane %v134_v37, 2  ;;  %v111_v47 = vmax.f32 %v109_v34, %v110_v39  ;;  %v159_v51 = vmax.f32 %v157_v36, %v158_v42 }
 0x183   :  { %v114_v43 = vsel %vm106_vm4, %v105_v40, -inf  ;;  %v130_v44 = vadd.f32 %v126_v41, %v105_v40 }
 0x184   :  { %v115_v46 = vrot.slane %v114_v43, 4  ;;  %v136_v52 = vmax.f32 %v134_v37, %v135_v45  ;;  %v112_v56 = vrot.slane %v111_v47, 1  ;;  %v160_v60 = vrot.slane %v159_v51, 2 }
 0x185   :  { %v139_v48 = vsel %vm131_vm5, %v130_v44, -inf }
 0x186   :  { %v116_v49 = vmax.f32 %v114_v43, %v115_v46  ;;  %v140_v50 = vrot.slane %v139_v48, 4  ;;  %v137_v1 = vrot.slane %v136_v52, 1  ;;  %v113_v2 = vmax.f32 %v111_v47, %v112_v56 }
 0x187   :  { %v161_v4 = vmax.f32 %v159_v51, %v160_v60 }
 0x188   :  { %v117_v53 = vrot.slane %v116_v49, 2  ;;  %v141_v54 = vmax.f32 %v139_v48, %v140_v50  ;;  %v151_v55 = vpop.permute.xlu1 %150  ;;  %v138_v8 = vmax.f32 %v136_v52, %v137_v1 }
 0x189   :  { %v155_v57 = vadd.f32 %v151_v55, %v130_v44  ;;  %v162_v13 = vrot.slane %v161_v4, 1 }
 0x18a   :  { %v118_v58 = vmax.f32 %v116_v49, %v117_v53  ;;  %v142_v59 = vrot.slane %v141_v54, 2 }
 0x18b   :  { %v164_v61 = vsel %vm156_vm6, %v155_v57, -inf  ;;  %v163_v15 = vmax.f32 %v161_v4, %v162_v13 }
 0x18c   :  { %v119_v62 = vrot.slane %v118_v58, 1  ;;  %v143_v63 = vmax.f32 %v141_v54, %v142_v59  ;;  %v165_v0 = vrot.slane %v164_v61, 4 }
 0x18e   :  { %v120_v3 = vmax.f32 %v118_v58, %v119_v62  ;;  %v166_v5 = vmax.f32 %v164_v61, %v165_v0  ;;  %v144_v6 = vrot.slane %v143_v63, 1 }
 0x190   :  { %v167_v7 = vrot.slane %v166_v5, 2  ;;  %v145_v9 = vmax.f32 %v143_v63, %v144_v6  ;;  %v174_v10 = vsel %vm173_vm7, %v120_v3, %v113_v2 }
 0x192   :  { %v168_v11 = vmax.f32 %v166_v5, %v167_v7  ;;  %v178_v12 = vsel %vm173_vm7, %v145_v9, %v138_v8 }
 0x193   :  { %179 = vrot.lane.b32.xlu2 %v178_v12, %s332_s29 }
 0x194   :  { %v169_v14 = vrot.slane %v168_v11, 1 }
 0x196   :  { %v170_v16 = vmax.f32 %v168_v11, %v169_v14 }
 0x198   :  { %v184_v17 = vsel %vm173_vm7, %v170_v16, %v163_v15 }
 0x199   :  { %185 = vrot.lane.b32.xlu0 %v184_v17, %s330_s0 }
 0x1ed   :  { %v180_v21 = vpop.permute.xlu2 %179 }
 0x1ee   :  { %v189_v23 = vsel %vm188_vm8, %v174_v10, %v180_v21 }
 0x20b   :  { %v186_v24 = vpop.permute.xlu0 %185 }
 0x20c   :  { %v191_v25 = vsel %vm190_vm9, %v189_v23, %v186_v24 }
 0x20d   :  { %v196_v26 = vadd.f32 %v271_v22, %v191_v25 }
 0x20f   :  { %v197_v27 = vmax.f32 %v196_v26, 0.0 }
 0x211   :  { %253 = vmatmul.msk.f32.vlgmr.msra.gmra.mxu1 %vm205_vm10, %v197_v27 }
 0x28e   :  { %v226_v29 = vpop.f32.mrf.mxu1 }
 0x28f   :  { %v227_v30 = vadd.f32 %v272_v28, %v226_v29 }
 0x291   :  { %230 = vst.msk [vmem:[#allocation5] sm:$0x3] %vm229_vm11, %v227_v30 }
 0x292   :  { %241 = dma.vmem_to_hbm [thread:$0]  %s237_s15, 32, %s239_s18, [#allocation4]  }
 0x293   :  { %323 = dma.done.wait [#allocation4], 32  }
 0x294   :  { %324 = vsyncadd [#allocation4], 4294967264 }
 0x295   :  { %246 = vsyncpa [#allocation3], 1 }
 0x296   :  { %247 = vsyncpa [#allocation4], 1 }

</bundles_post_ra>
